<compile_context>
chip_gen: v7x
topology: tpu7x:2x2x1
jax: 0.10.0
libtpu: 0.0.40
codegen_flags: <defaults>
</compile_context>

<pallas_src>
import functools

import jax
import jax.numpy as jnp
from jax.experimental import pallas as pl
from jax.experimental.pallas import tpu as pltpu


def _round_up(x, m):
    return ((x + m - 1) // m) * m


def _weighted_dice_kernel(p_ref, t_ref, dice_ref, acc_i_ref, acc_u_ref, *,
                          w0, w1, smooth, n, tile_n, ragged):
    k = pl.program_id(1)
    nk = pl.num_programs(1)

    @pl.when(k == 0)
    def _init():
        acc_i_ref[...] = jnp.zeros_like(acc_i_ref)
        acc_u_ref[...] = jnp.zeros_like(acc_u_ref)

    p = p_ref[...].astype(jnp.float32)
    t = t_ref[...].astype(jnp.float32)

    if ragged:
        # Zero out lanes past the true length N on the ragged last tile.
        col = jax.lax.broadcasted_iota(jnp.int32, p.shape, 1) + k * tile_n
        valid = col < n
        p = jnp.where(valid, p, 0.0)
        t = jnp.where(valid, t, 0.0)

    w = t * (w1 - w0) + w0
    wp = w * p
    wt = w * t

    # Pure-VPU elementwise accumulation; cross-lane reduce deferred to finalize.
    acc_i_ref[...] += wp * wt
    acc_u_ref[...] += wp * wp + wt * wt

    @pl.when(k == nk - 1)
    def _finalize():
        inter = jnp.sum(acc_i_ref[...], axis=-1, keepdims=True)   # (TILE_B, 1)
        union = jnp.sum(acc_u_ref[...], axis=-1, keepdims=True)   # (TILE_B, 1)
        dice_ref[...] = 1.0 - (2.0 * inter + smooth) / (union + smooth)


def weighted_dice_loss(logit, truth, weights=(0.5, 0.5), smooth=1e-5,
                       tile_n=None):
    """JAX/Pallas equivalent of WeightedDiceLoss.forward."""
    assert logit.shape == truth.shape
    b = logit.shape[0]

    p = jnp.reshape(logit, (b, -1))
    t = jnp.reshape(truth, (b, -1))
    n = p.shape[1]

    # Batch tile: multiple of the sublane requirement (8 for f32, 16 for bf16)
    # or the full batch dim (always legal).
    sub = max(32 // jnp.dtype(p.dtype).itemsize,
              32 // jnp.dtype(t.dtype).itemsize, 8)
    tile_b = sub if (b > sub and b % sub == 0) else b
    nb = b // tile_b

    # Reduction tile: multiple of 128, capped so the resident VMEM
    # (2 inputs x 2 pipeline buffers + 2 f32 scratch accumulators) stays a
    # few MiB -- comfortably under the v7x / v5e scoped-VMEM limits.
    if tile_n is None:
        tile_n = 8192
    tile_n = min(_round_up(tile_n, 128), _round_up(n, 128))
    cap = max(128, ((2 * 1024 * 1024) // (tile_b * 4)) // 128 * 128)
    tile_n = max(128, min(tile_n, cap))

    nk = pl.cdiv(n, tile_n)
    ragged = (n % tile_n) != 0

    kernel = functools.partial(
        _weighted_dice_kernel,
        w0=float(weights[0]),
        w1=float(weights[1]),
        smooth=float(smooth),
        n=n,
        tile_n=tile_n,
        ragged=ragged,
    )

    dice = pl.pallas_call(
        kernel,
        out_shape=jax.ShapeDtypeStruct((b, 1), jnp.float32),
        grid_spec=pltpu.PrefetchScalarGridSpec(
            num_scalar_prefetch=0,
            grid=(nb, nk),
            in_specs=[
                pl.BlockSpec((tile_b, tile_n), lambda i, k: (i, k)),
                pl.BlockSpec((tile_b, tile_n), lambda i, k: (i, k)),
            ],
            out_specs=pl.BlockSpec((tile_b, 1), lambda i, k: (i, 0)),
            scratch_shapes=[
                pltpu.VMEM((tile_b, tile_n), jnp.float32),
                pltpu.VMEM((tile_b, tile_n), jnp.float32),
            ],
        ),
        compiler_params=pltpu.CompilerParams(
            dimension_semantics=("parallel", "arbitrary"),
            vmem_limit_bytes=32 * 1024 * 1024,
        ),
    )(p, t)

    # Tiny (B,) mean -> scalar loss.
    return jnp.mean(dice)


def _reference(logit, truth, weights=(0.5, 0.5), smooth=1e-5):
    b = logit.shape[0]
    p = jnp.reshape(logit, (b, -1)).astype(jnp.float32)
    t = jnp.reshape(truth, (b, -1)).astype(jnp.float32)
    w = t * (weights[1] - weights[0]) + weights[0]
    p = w * p
    t = w * t
    inter = jnp.sum(p * t, axis=-1)
    union = jnp.sum(p * p, axis=-1) + jnp.sum(t * t, axis=-1)
    dice = 1.0 - (2.0 * inter + smooth) / (union + smooth)
    return jnp.mean(dice)


if __name__ == "__main__":
    key = jax.random.PRNGKey(0)
    k1, k2, k3, k4, k5, k6 = jax.random.split(key, 6)

    # Test 1: small NCHW head, N = 1024 (single tile, no masking needed).
    B, C, H, W = 2, 4, 16, 16
    logit1 = jax.nn.sigmoid(jax.random.normal(k1, (B, C, H, W), jnp.float32))
    truth1 = (jax.random.uniform(k2, (B, C, H, W)) > 0.5).astype(jnp.float32)
    loss1 = jax.block_until_ready(weighted_dice_loss(logit1, truth1))
    ref1 = _reference(logit1, truth1)
    assert jnp.allclose(loss1, ref1, atol=1e-5, rtol=1e-5), (loss1, ref1)

    # Test 2: ragged N (3*19*23 = 1311) with a forced small tile ->
    # multi-tile accumulation + in-kernel lane masking.
    B, C, H, W = 2, 3, 19, 23
    logit2 = jax.nn.sigmoid(jax.random.normal(k3, (B, C, H, W), jnp.float32))
    truth2 = (jax.random.uniform(k4, (B, C, H, W)) > 0.5).astype(jnp.float32)
    loss2 = jax.block_until_ready(weighted_dice_loss(logit2, truth2, tile_n=512))
    ref2 = _reference(logit2, truth2)
    assert jnp.allclose(loss2, ref2, atol=1e-5, rtol=1e-5), (loss2, ref2)

    # Test 3: B = 16 exercises the parallel batch tiling (tile_b=8, 2 B-tiles)
    # plus a ragged reduction axis.
    B, C, H, W = 16, 1, 16, 24
    logit3 = jax.nn.sigmoid(jax.random.normal(k5, (B, C, H, W), jnp.float32))
    truth3 = (jax.random.uniform(k6, (B, C, H, W)) > 0.5).astype(jnp.float32)
    loss3 = jax.block_until_ready(weighted_dice_loss(logit3, truth3, tile_n=256))
    ref3 = _reference(logit3, truth3)
    assert jnp.allclose(loss3, ref3, atol=1e-5, rtol=1e-5), (loss3, ref3)

    print("KERNEL_OK")
</pallas_src>

<mosaic_0001>
module attributes {stable_mosaic.version = 11 : i64} {
  func.func @_weighted_dice_kernel(%arg0: i32, %arg1: i32, %arg2: memref<2x1024xf32, #tpu.memory_space<vmem>>, %arg3: memref<2x1024xf32, #tpu.memory_space<vmem>>, %arg4: memref<2x1xf32, #tpu.memory_space<vmem>>, %arg5: memref<2x1024xf32, #tpu.memory_space<vmem>>, %arg6: memref<2x1024xf32, #tpu.memory_space<vmem>>) attributes {dimension_semantics = [#tpu.dimension_semantics<parallel>, #tpu.dimension_semantics<arbitrary>], iteration_bounds = array<i64: 1, 1>, scalar_prefetch = 0 : i64, scratch_operands = 2 : i64, tpu.core_type = #tpu.core_type<tc>, window_params = [{transform_indices = @transform_0, window_bounds = array<i64: 2, 1024>}, {transform_indices = @transform_1, window_bounds = array<i64: 2, 1024>}, {transform_indices = @transform_2, window_bounds = array<i64: 2, 1>}]} {
    %c0_i32 = arith.constant 0 : i32
    %0 = arith.cmpi eq, %arg1, %c0_i32 : i32
    %1 = arith.extui %0 : i1 to i32
    %c0_i32_0 = arith.constant 0 : i32
    %2 = arith.cmpi ne, %1, %c0_i32_0 : i32
    scf.if %2 {
      %cst_15 = arith.constant 0.000000e+00 : f32
      %24 = vector.broadcast %cst_15 : f32 to vector<2x1024xf32>
      %c0_16 = arith.constant 0 : index
      %c0_17 = arith.constant 0 : index
      %25 = vector.load %arg5[%c0_16, %c0_17] : memref<2x1024xf32, #tpu.memory_space<vmem>>, vector<2x1024xf32>
      tpu.vector_store %arg5[%c0_16, %c0_17], %24 {strides = array<i32>} : memref<2x1024xf32, #tpu.memory_space<vmem>>, vector<2x1024xf32>,
      %cst_18 = arith.constant 0.000000e+00 : f32
      %26 = vector.broadcast %cst_18 : f32 to vector<2x1024xf32>
      %c0_19 = arith.constant 0 : index
      %c0_20 = arith.constant 0 : index
      %27 = vector.load %arg6[%c0_19, %c0_20] : memref<2x1024xf32, #tpu.memory_space<vmem>>, vector<2x1024xf32>
      tpu.vector_store %arg6[%c0_19, %c0_20], %26 {strides = array<i32>} : memref<2x1024xf32, #tpu.memory_space<vmem>>, vector<2x1024xf32>,
    } else {
    }
    %c0 = arith.constant 0 : index
    %c0_1 = arith.constant 0 : index
    %3 = vector.load %arg2[%c0, %c0_1] : memref<2x1024xf32, #tpu.memory_space<vmem>>, vector<2x1024xf32>
    %c0_2 = arith.constant 0 : index
    %c0_3 = arith.constant 0 : index
    %4 = vector.load %arg3[%c0_2, %c0_3] : memref<2x1024xf32, #tpu.memory_space<vmem>>, vector<2x1024xf32>
    %cst = arith.constant 0.000000e+00 : f32
    %5 = vector.broadcast %cst : f32 to vector<2x1024xf32>
    %6 = arith.mulf %4, %5 : vector<2x1024xf32>
    %cst_4 = arith.constant 5.000000e-01 : f32
    %7 = vector.broadcast %cst_4 : f32 to vector<2x1024xf32>
    %8 = arith.addf %6, %7 : vector<2x1024xf32>
    %9 = arith.mulf %8, %3 : vector<2x1024xf32>
    %10 = arith.mulf %8, %4 : vector<2x1024xf32>
    %c0_5 = arith.constant 0 : index
    %c0_6 = arith.constant 0 : index
    %11 = vector.load %arg5[%c0_5, %c0_6] : memref<2x1024xf32, #tpu.memory_space<vmem>>, vector<2x1024xf32>
    %12 = arith.mulf %9, %10 : vector<2x1024xf32>
    %13 = arith.addf %11, %12 : vector<2x1024xf32>
    %c0_7 = arith.constant 0 : index
    %c0_8 = arith.constant 0 : index
    %14 = vector.load %arg5[%c0_7, %c0_8] : memref<2x1024xf32, #tpu.memory_space<vmem>>, vector<2x1024xf32>
    tpu.vector_store %arg5[%c0_7, %c0_8], %13 {strides = array<i32>} : memref<2x1024xf32, #tpu.memory_space<vmem>>, vector<2x1024xf32>,
    %c0_9 = arith.constant 0 : index
    %c0_10 = arith.constant 0 : index
    %15 = vector.load %arg6[%c0_9, %c0_10] : memref<2x1024xf32, #tpu.memory_space<vmem>>, vector<2x1024xf32>
    %16 = arith.mulf %9, %9 : vector<2x1024xf32>
    %17 = arith.mulf %10, %10 : vector<2x1024xf32>
    %18 = arith.addf %16, %17 : vector<2x1024xf32>
    %19 = arith.addf %15, %18 : vector<2x1024xf32>
    %c0_11 = arith.constant 0 : index
    %c0_12 = arith.constant 0 : index
    %20 = vector.load %arg6[%c0_11, %c0_12] : memref<2x1024xf32, #tpu.memory_space<vmem>>, vector<2x1024xf32>
    tpu.vector_store %arg6[%c0_11, %c0_12], %19 {strides = array<i32>} : memref<2x1024xf32, #tpu.memory_space<vmem>>, vector<2x1024xf32>,
    %c0_i32_13 = arith.constant 0 : i32
    %21 = arith.cmpi eq, %arg1, %c0_i32_13 : i32
    %22 = arith.extui %21 : i1 to i32
    %c0_i32_14 = arith.constant 0 : i32
    %23 = arith.cmpi ne, %22, %c0_i32_14 : i32
    scf.if %23 {
      %c0_15 = arith.constant 0 : index
      %c0_16 = arith.constant 0 : index
      %24 = vector.load %arg5[%c0_15, %c0_16] : memref<2x1024xf32, #tpu.memory_space<vmem>>, vector<2x1024xf32>
      %cst_17 = arith.constant dense<0.000000e+00> : vector<2xf32>
      %25 = vector.multi_reduction <add>, %24, %cst_17 [1] : vector<2x1024xf32> to vector<2xf32>
      %26 = vector.shape_cast %25 : vector<2xf32> to vector<2x1xf32>
      %c0_18 = arith.constant 0 : index
      %c0_19 = arith.constant 0 : index
      %27 = vector.load %arg6[%c0_18, %c0_19] : memref<2x1024xf32, #tpu.memory_space<vmem>>, vector<2x1024xf32>
      %cst_20 = arith.constant dense<0.000000e+00> : vector<2xf32>
      %28 = vector.multi_reduction <add>, %27, %cst_20 [1] : vector<2x1024xf32> to vector<2xf32>
      %29 = vector.shape_cast %28 : vector<2xf32> to vector<2x1xf32>
      %cst_21 = arith.constant 2.000000e+00 : f32
      %30 = vector.broadcast %cst_21 : f32 to vector<2x1xf32>
      %31 = arith.mulf %30, %26 : vector<2x1xf32>
      %cst_22 = arith.constant 9.99999974E-6 : f32
      %32 = vector.broadcast %cst_22 : f32 to vector<2x1xf32>
      %33 = arith.addf %31, %32 : vector<2x1xf32>
      %cst_23 = arith.constant 9.99999974E-6 : f32
      %34 = vector.broadcast %cst_23 : f32 to vector<2x1xf32>
      %35 = arith.addf %29, %34 : vector<2x1xf32>
      %36 = arith.divf %33, %35 : vector<2x1xf32>
      %cst_24 = arith.constant 1.000000e+00 : f32
      %37 = vector.broadcast %cst_24 : f32 to vector<2x1xf32>
      %38 = arith.subf %37, %36 : vector<2x1xf32>
      %c0_25 = arith.constant 0 : index
      %c0_26 = arith.constant 0 : index
      %39 = vector.load %arg4[%c0_25, %c0_26] : memref<2x1xf32, #tpu.memory_space<vmem>>, vector<2x1xf32>
      tpu.vector_store %arg4[%c0_25, %c0_26], %38 {strides = array<i32>} : memref<2x1xf32, #tpu.memory_space<vmem>>, vector<2x1xf32>,
    } else {
    }
    return
  }
  func.func @transform_0(%arg0: i32, %arg1: i32) -> (i32, i32) {
    %c0_i32 = arith.constant 0 : i32
    return %arg0, %arg1 : i32, i32
  }
  func.func @transform_1(%arg0: i32, %arg1: i32) -> (i32, i32) {
    %c0_i32 = arith.constant 0 : i32
    return %arg0, %arg1 : i32, i32
  }
  func.func @transform_2(%arg0: i32, %arg1: i32) -> (i32, i32) {
    %c0_i32 = arith.constant 0 : i32
    %c0_i32_0 = arith.constant 0 : i32
    return %arg0, %c0_i32 : i32, i32
  }
}

</mosaic_0001>

<bundles_post_ra>
// kernel: tpu_custom_call.1
= control target key start
LH: loop header
LB: loop body
LE: loop exit
PB: predicated region body
PF: predicated region fallthrough
CT: control target
= control target key end

     0   :  { %7 = vsyncpa [#allocation5], 0  ;;  %s333_s0 = inlined_call_operand.hbm [shape: f32[2,1024], index: 0, kind: input, shape index: {}]   ;;  %s334_s1 = inlined_call_operand.hbm [shape: f32[2,1024], index: 1, kind: input, shape index: {}]   ;;  %s335_s2 = inlined_call_operand.vmem [shape: f32[2,1], index: 2, kind: output, shape index: {}]  }
   0x1   :  { %8 = vsyncpa [#allocation7], 0  ;;  %s272_s9 = smov [#allocation4]   ;;  %s273_s11 = smov [#allocation6]  }
   0x2   :  { %s15_s10 = sshll.u32 %s272_s9, 4  ;;  %s25_s12 = sshll.u32 %s273_s11, 4  ;;  %s16_s10 = int_to_ptr.vmem [resolvable:$true] %s15_s10  ;;  %s26_s12 = int_to_ptr.vmem [resolvable:$true] %s25_s12 }
   0x3   :  { %s224_s15 = scalar_lea.hbm %s333_s0, 256 }
   0x4   :  { %p225_p0 = scmp.ne.s32.totalorder %s333_s0, %s224_s15  ;;  %p228_p1 = scmp.lt.u32.totalorder %s224_s15, %s333_s0 }
   0x6   :  { %p230_p2 = pnand %p228_p1, %p225_p0 }
   0x8   :  { %233 = shalt.err (!%p230_p2)
}
   0x9   :  { %s234_s20 = scalar_lea.vmem %s16_s10, 256  ;;  %p239_p4 = scmp.lt.s32.totalorder %s16_s10, %s16_s10 }
   0xa   :  { %p235_p3 = scmp.ne.s32.totalorder %s16_s10, %s234_s20  ;;  %p240_p5 = scmp.lt.s32.totalorder %s234_s20, %s234_s20 }
   0xc   :  { %p241_p6 = por %p240_p5, %p239_p4 }
   0xe   :  { %p242_p7 = pnand %p241_p6, %p235_p3 }
  0x10   :  { %245 = shalt.err (!%p242_p7)
}
  0x11   :  { %18 = dma.hbm_to_vmem [thread:$0]  %s333_s0, 256, %s16_s10, [#allocation5]  }
  0x12   :  { %s246_s25 = scalar_lea.hbm %s334_s1, 256 }
  0x13   :  { %p247_p8 = scmp.ne.s32.totalorder %s334_s1, %s246_s25  ;;  %p250_p9 = scmp.lt.u32.totalorder %s246_s25, %s334_s1 }
  0x15   :  { %p252_p10 = pnand %p250_p9, %p247_p8 }
  0x17   :  { %255 = shalt.err (!%p252_p10)
}
  0x18   :  { %s256_s30 = scalar_lea.vmem %s26_s12, 256  ;;  %p261_p12 = scmp.lt.s32.totalorder %s26_s12, %s26_s12 }
  0x19   :  { %p257_p11 = scmp.ne.s32.totalorder %s26_s12, %s256_s30  ;;  %p262_p13 = scmp.lt.s32.totalorder %s256_s30, %s256_s30 }
  0x1b   :  { %p263_p0 = por %p262_p13, %p261_p12 }
  0x1d   :  { %p264_p1 = pnand %p263_p0, %p257_p11 }
  0x1f   :  { %267 = shalt.err (!%p264_p1)
}
  0x20   :  { %28 = dma.hbm_to_vmem [thread:$0]  %s334_s1, 256, %s26_s12, [#allocation7]  }
  0x21   :  { %268 = dma.done.wait [#allocation5], 256  }
  0x22   :  { %269 = vsyncadd [#allocation5], 4294967040 }
  0x23   :  { %270 = dma.done.wait [#allocation7], 256  }
  0x24   :  { %271 = vsyncadd [#allocation7], 4294967040  ;;  %v274_v0 = vmov 1983009808   ;;  %v86_v2 = vlaneseq  ;;  %v45_v3 = vld [vmem:[#allocation6] sm:$0xff]  ;;  %v46_v4 = vld [vmem:[#allocation6 + $0x8] sm:$0xff] }
  0x25   :  { %v84_v1 = vunpack.c.l.s4 %v274_v0  ;;  %v47_v5 = vmul.f32 0.0, %v45_v3  ;;  %v43_v6 = vld [vmem:[#allocation4] sm:$0xff]  ;;  %v48_v7 = vmul.f32 0.0, %v46_v4  ;;  %v44_v8 = vld [vmem:[#allocation4 + $0x8] sm:$0xff]  ;;  %vm124_vm0 = vcmask 1041408  }
  0x26   :  { %v87_v11 = vshrl.u32 %v86_v2, 7  ;;  %vm211_vm1 = vcmask 1024  }
  0x27   :  { %v49_v9 = vadd.f32 0.5, %v47_v5  ;;  %v85_v10 = vunpack.c.0.s8 %v84_v1  ;;  %v50_v12 = vadd.f32 0.5, %v48_v7 }
  0x29   :  { %v51_v13 = vmul.f32 %v49_v9, %v43_v6  ;;  %v53_v14 = vmul.f32 %v49_v9, %v45_v3  ;;  %v52_v15 = vmul.f32 %v50_v12, %v44_v8  ;;  %v54_v16 = vmul.f32 %v50_v12, %v46_v4 }
  0x2a   :  { %v88_v19 = vsub.s32 %v85_v10, %v87_v11 }
  0x2b   :  { %v65_v17 = vmul.f32 %v51_v13, %v51_v13  ;;  %v67_v18 = vmul.f32 %v53_v14, %v53_v14  ;;  %v57_v20 = vmul.f32 %v53_v14, %v51_v13  ;;  %v66_v21 = vmul.f32 %v52_v15, %v52_v15 }
  0x2c   :  { %v68_v22 = vmul.f32 %v54_v16, %v54_v16  ;;  %v58_v27 = vmul.f32 %v54_v16, %v52_v15 }
  0x2d   :  { %v69_v23 = vadd.f32 %v67_v18, %v65_v17  ;;  %v82_v24 = vcombine.high %v57_v20, %v57_v20  ;;  %v89_v25 = vrot.slane %v57_v20, %v88_v19 }
  0x2e   :  { %v70_v26 = vadd.f32 %v68_v22, %v66_v21  ;;  %v99_v38 = vcombine.high %v58_v27, %v58_v27  ;;  %v106_v39 = vrot.slane %v58_v27, %v88_v19 }
  0x2f   :  { %v146_v28 = vcombine.high %v69_v23, %v69_v23  ;;  %v153_v29 = vrot.slane %v69_v23, %v88_v19  ;;  %v96_v30 = vrot.slane %v82_v24, %v88_v19  ;;  %v97_v32 = vcombine.high %v89_v25, %v89_v25 }
  0x30   :  { %v163_v31 = vcombine.high %v70_v26, %v70_v26  ;;  %v170_v35 = vrot.slane %v70_v26, %v88_v19  ;;  %v125_v43 = vsel %vm124_vm0, %v89_v25, 0.0  ;;  %v113_v53 = vrot.slane %v99_v38, %v88_v19 }
  0x31   :  { %v160_v33 = vrot.slane %v146_v28, %v88_v19  ;;  %v161_v34 = vcombine.high %v153_v29, %v153_v29  ;;  %v188_v36 = vsel %vm124_vm0, %v153_v29, 0.0  ;;  %v98_v37 = vcombine.high %v96_v30, %v96_v30 }
  0x32   :  { %v177_v44 = vrot.slane %v163_v31, %v88_v19  ;;  %v178_v46 = vcombine.high %v170_v35, %v170_v35  ;;  %v126_v48 = vsel %vm124_vm0, %v97_v32, 0.0  ;;  %v128_v49 = vsel %vm124_vm0, %v96_v30, 0.0 }
  0x33   :  { %v162_v40 = vcombine.high %v160_v33, %v160_v33  ;;  %v189_v41 = vsel %vm124_vm0, %v161_v34, 0.0  ;;  %v191_v42 = vsel %vm124_vm0, %v160_v33, 0.0  ;;  %v127_v51 = vadd.f32 %v126_v48, %v125_v43 }
  0x34   :  { %v190_v45 = vadd.f32 %v189_v41, %v188_v36  ;;  %v195_v52 = vsel %vm124_vm0, %v170_v35, 0.0  ;;  %v114_v54 = vcombine.high %v106_v39, %v106_v39  ;;  %v130_v55 = vsel %vm124_vm0, %v98_v37, 0.0 }
  0x35   :  { %v193_v47 = vsel %vm124_vm0, %v162_v40, 0.0  ;;  %v129_v57 = vadd.f32 %v128_v49, %v127_v51  ;;  %v179_v58 = vcombine.high %v177_v44, %v177_v44  ;;  %v197_v59 = vsel %vm124_vm0, %v178_v46, 0.0 }
  0x36   :  { %v192_v50 = vadd.f32 %v191_v42, %v190_v45  ;;  %v132_v60 = vsel %vm124_vm0, %v106_v39, 0.0  ;;  %v199_v63 = vsel %vm124_vm0, %v177_v44, 0.0  ;;  %v115_v0 = vcombine.high %v113_v53, %v113_v53 }
  0x37   :  { %v131_v62 = vadd.f32 %v130_v55, %v129_v57  ;;  %v134_v1 = vsel %vm124_vm0, %v114_v54, 0.0  ;;  %v201_v4 = vsel %vm124_vm0, %v179_v58, 0.0  ;;  %v136_v5 = vsel %vm124_vm0, %v113_v53, 0.0 }
  0x38   :  { %v194_v56 = vadd.f32 %v193_v47, %v192_v50  ;;  %v138_v8 = vsel %vm124_vm0, %v115_v0, 0.0 }
  0x39   :  { %v133_v3 = vadd.f32 %v132_v60, %v131_v62 }
  0x3a   :  { %v196_v61 = vadd.f32 %v195_v52, %v194_v56 }
  0x3b   :  { %v135_v7 = vadd.f32 %v134_v1, %v133_v3 }
  0x3c   :  { %v198_v2 = vadd.f32 %v197_v59, %v196_v61 }
  0x3d   :  { %v137_v10 = vadd.f32 %v136_v5, %v135_v7 }
  0x3e   :  { %v200_v6 = vadd.f32 %v199_v63, %v198_v2 }
  0x3f   :  { %v139_v11 = vadd.f32 %v138_v8, %v137_v10 }
  0x40   :  { %v202_v9 = vadd.f32 %v201_v4, %v200_v6 }
  0x42   :  { %203 = vadd.xlane.f32.xlu0 %v202_v9 }
  0x46   :  { %140 = vadd.xlane.f32.xlu0 %v139_v11 }
  0xcf   :  { %v204_v12 = vpop.xlane.xlu0 %203 }
  0xd0   :  { %v207_v13 = vadd.f32 1e-05, %v204_v12 }
  0xd2   :  { %222 = vrcp.f32 %v207_v13 }
  0xd3   :  { %v141_v14 = vpop.xlane.xlu0 %140 }
  0xd4   :  { %v205_v15 = vmul.f32 2.0, %v141_v14 }
  0xd6   :  { %v206_v16 = vadd.f32 1e-05, %v205_v15 }
  0xdc   :  { %v223_v17 = vpop.eup %222 }
  0xdd   :  { %v209_v18 = vmul.f32 %v223_v17, %v206_v16 }
  0xdf   :  { %v210_v19 = vsub.f32 1.0, %v209_v18 }
  0xe1   :  { %212 = vst.msk [vmem:[%s335_s2] sm:$0x3] %vm211_vm1, %v210_v19 }
  0xe2   :  { %217 = vsyncpa [#allocation5], 1 }
  0xe3   :  { %218 = vsyncpa [#allocation7], 1 }

</bundles_post_ra>
